<compile_context>
chip_gen: v6e
topology: v6e:2x2x1
jax: 0.10.0
libtpu: 0.0.40
codegen_flags: <defaults>
</compile_context>

<pallas_src>
import jax
import jax.numpy as jnp
from jax.experimental import pallas as pl
from jax.experimental.pallas import tpu as pltpu

H1 = 256          # fc1 output width (already lane/MXU friendly)
H2 = 64           # fc2 logical output width (PyTorch module)
H2_PAD = 128      # fc2 padded width (zero-padded, identity through relu)
C_PAD = 128       # padded class dim (lane-dense output)
NEG_BIAS = -1e30  # bias for padded class lanes -> softmax weight exactly 0


def mlp_kernel(x_ref, w1_ref, b1_ref, w2_ref, b2_ref, w3_ref, b3_ref, o_ref):
    # fc1 + relu  (bf16 operands, f32 accumulation on the MXU)
    h1 = jnp.dot(x_ref[...], w1_ref[...], preferred_element_type=jnp.float32)
    h1 = jnp.maximum(h1 + b1_ref[...], 0.0).astype(jnp.bfloat16)
    # fc2 + relu  (output padded to 128 lanes; padded lanes stay 0 through relu)
    h2 = jnp.dot(h1, w2_ref[...], preferred_element_type=jnp.float32)
    h2 = jnp.maximum(h2 + b2_ref[...], 0.0).astype(jnp.bfloat16)
    # fc3 (classes padded to 128 lanes; padded lanes carry a -1e30 bias)
    logits = jnp.dot(h2, w3_ref[...], preferred_element_type=jnp.float32)
    logits = logits + b3_ref[...]
    # numerically stable softmax over the (padded) class axis, in f32
    m = jnp.max(logits, axis=-1, keepdims=True)
    e = jnp.exp(logits - m)                       # padded lanes -> exp(-huge) = 0
    denom = jnp.sum(e, axis=-1, keepdims=True)
    o_ref[...] = (e * pl.reciprocal(denom, approx=True)).astype(o_ref.dtype)


def _round_up(n, m):
    return ((n + m - 1) // m) * m


def _pad_params(params):
    """Pad hidden2 (64->128) and class dim (C->128); cast weights to bf16."""
    w1, b1 = params["w1"], params["b1"]
    w2, b2 = params["w2"], params["b2"]
    w3, b3 = params["w3"], params["b3"]
    c = w3.shape[1]
    # fc2: zero-pad output features 64 -> 128 (identity through relu)
    w2p = jnp.pad(w2, ((0, 0), (0, H2_PAD - w2.shape[1])))
    b2p = jnp.pad(b2, ((0, 0), (0, H2_PAD - b2.shape[1])))
    # fc3: zero-pad contraction 64 -> 128 and classes c -> 128
    w3p = jnp.pad(w3, ((0, H2_PAD - w3.shape[0]), (0, C_PAD - c)))
    # padded class lanes get a huge negative bias so softmax weight is 0
    b3p = jnp.pad(b3, ((0, 0), (0, C_PAD - c)), constant_values=NEG_BIAS)
    return (
        w1.astype(jnp.bfloat16), b1.astype(jnp.float32),
        w2p.astype(jnp.bfloat16), b2p.astype(jnp.float32),
        w3p.astype(jnp.bfloat16), b3p.astype(jnp.float32),
        c,
    )


def mnist_classifier_forward(x, params, *, tm_max=512):
    """x: (B, in_features) float32. params: dict of (w1,b1,w2,b2,w3,b3)."""
    B, d_in = x.shape
    w1, b1, w2, b2, w3, b3, out_features = _pad_params(params)

    # Batch tile: multiple of 8 sublanes, capped at tm_max rows per grid step.
    tm = min(tm_max, _round_up(B, 8))
    b_pad = _round_up(B, tm)
    xb = x.astype(jnp.bfloat16)
    if b_pad != B:
        xb = jnp.pad(xb, ((0, b_pad - B), (0, 0)))
    nb = b_pad // tm

    # Grid-invariant (resident) block for weights / biases.
    inv = lambda shape: pl.BlockSpec(shape, lambda i: (0,) * len(shape))

    out = pl.pallas_call(
        mlp_kernel,
        out_shape=jax.ShapeDtypeStruct((b_pad, C_PAD), jnp.float32),
        grid=(nb,),
        in_specs=[
            pl.BlockSpec((tm, d_in), lambda i: (i, 0)),   # x: tiled over batch
            inv(w1.shape), inv(b1.shape),
            inv(w2.shape), inv(b2.shape),
            inv(w3.shape), inv(b3.shape),
        ],
        out_specs=pl.BlockSpec((tm, C_PAD), lambda i: (i, 0)),
        compiler_params=pltpu.CompilerParams(
            dimension_semantics=("parallel",),            # megacore on v7x
            vmem_limit_bytes=32 * 1024 * 1024,            # safe on v5e/v6e/v7x
        ),
    )(xb, w1, b1, w2, b2, w3, b3)

    # Drop batch padding and the padded class lanes.
    return out[:B, :out_features]


def init_params(key, in_features, out_features):
    """Deterministic init mimicking nn.Linear shapes.

    PyTorch Linear stores weight as (out, in); we store the transpose (in, out)
    so the kernel does x @ W directly. Biases are kept 2D (1, out) for TPU.
    """
    dims = [(in_features, H1), (H1, H2), (H2, out_features)]
    params = {}
    for i, (d_in, d_out) in enumerate(dims, start=1):
        key, kw, kb = jax.random.split(key, 3)
        bound = 1.0 / (d_in ** 0.5)
        params[f"w{i}"] = jax.random.uniform(
            kw, (d_in, d_out), jnp.float32, minval=-bound, maxval=bound
        )
        params[f"b{i}"] = jax.random.uniform(
            kb, (1, d_out), jnp.float32, minval=-bound, maxval=bound
        )
    return params


def reference_forward(x, params):
    """Pure-JAX f32 reference matching the PyTorch module."""
    h1 = jnp.maximum(x @ params["w1"] + params["b1"], 0.0)
    h2 = jnp.maximum(h1 @ params["w2"] + params["b2"], 0.0)
    return jax.nn.softmax(h2 @ params["w3"] + params["b3"], axis=-1)


if __name__ == "__main__":
    # Small shapes consistent with the module: batch=8, in_features=128, 10 classes.
    B, IN_FEATURES, OUT_FEATURES = 8, 128, 10

    key = jax.random.PRNGKey(0)
    key, kx = jax.random.split(key)
    x = jax.random.normal(kx, (B, IN_FEATURES), jnp.float32)
    params = init_params(key, IN_FEATURES, OUT_FEATURES)

    out = mnist_classifier_forward(x, params)
    out = jax.block_until_ready(out)

    # Sanity: shape, rows ~sum to 1 (approx reciprocal + bf16 => looser tol),
    # and agreement with a pure-JAX f32 reference.
    assert out.shape == (B, OUT_FEATURES)
    assert jnp.allclose(jnp.sum(out, axis=1), 1.0, atol=2e-2)
    ref = reference_forward(x, params)
    assert jnp.allclose(out, ref, atol=5e-2)

    print("KERNEL_OK")
</pallas_src>

<mosaic_0001>
module attributes {stable_mosaic.version = 11 : i64} {
  func.func @mlp_kernel(%arg0: i32, %arg1: memref<8x128xbf16, #tpu.memory_space<vmem>>, %arg2: memref<128x256xbf16, #tpu.memory_space<vmem>>, %arg3: memref<1x256xf32, #tpu.memory_space<vmem>>, %arg4: memref<256x128xbf16, #tpu.memory_space<vmem>>, %arg5: memref<1x128xf32, #tpu.memory_space<vmem>>, %arg6: memref<128x128xbf16, #tpu.memory_space<vmem>>, %arg7: memref<1x128xf32, #tpu.memory_space<vmem>>, %arg8: memref<8x128xf32, #tpu.memory_space<vmem>>) attributes {dimension_semantics = [#tpu.dimension_semantics<parallel>], iteration_bounds = array<i64: 1>, scalar_prefetch = 0 : i64, scratch_operands = 0 : i64, tpu.core_type = #tpu.core_type<tc>, window_params = [{transform_indices = @transform_0, window_bounds = array<i64: 8, 128>}, {pipeline_mode = #tpu.pipeline_mode<synchronous>, transform_indices = @transform_1, window_bounds = array<i64: 128, 256>}, {pipeline_mode = #tpu.pipeline_mode<synchronous>, transform_indices = @transform_2, window_bounds = array<i64: 1, 256>}, {pipeline_mode = #tpu.pipeline_mode<synchronous>, transform_indices = @transform_3, window_bounds = array<i64: 256, 128>}, {pipeline_mode = #tpu.pipeline_mode<synchronous>, transform_indices = @transform_4, window_bounds = array<i64: 1, 128>}, {pipeline_mode = #tpu.pipeline_mode<synchronous>, transform_indices = @transform_5, window_bounds = array<i64: 128, 128>}, {pipeline_mode = #tpu.pipeline_mode<synchronous>, transform_indices = @transform_6, window_bounds = array<i64: 1, 128>}, {transform_indices = @transform_7, window_bounds = array<i64: 8, 128>}]} {
    %c0 = arith.constant 0 : index
    %c0_0 = arith.constant 0 : index
    %0 = vector.load %arg1[%c0, %c0_0] : memref<8x128xbf16, #tpu.memory_space<vmem>>, vector<8x128xbf16>
    %c0_1 = arith.constant 0 : index
    %c0_2 = arith.constant 0 : index
    %1 = vector.load %arg2[%c0_1, %c0_2] : memref<128x256xbf16, #tpu.memory_space<vmem>>, vector<128x256xbf16>
    %cst = arith.constant dense<0.000000e+00> : vector<8x256xf32>
    %2 = tpu.matmul %0, %1, %cst {dimension_numbers = #tpu.dot_dimension_numbers<[1], [0], [0], [1], [0, 0, 1, 1], [], []>} : vector<8x128xbf16>, vector<128x256xbf16>, vector<8x256xf32> -> vector<8x256xf32>
    %c0_3 = arith.constant 0 : index
    %c0_4 = arith.constant 0 : index
    %3 = vector.load %arg3[%c0_3, %c0_4] : memref<1x256xf32, #tpu.memory_space<vmem>>, vector<1x256xf32>
    %4 = vector.broadcast %3 : vector<1x256xf32> to vector<8x256xf32>
    %5 = arith.addf %2, %4 : vector<8x256xf32>
    %cst_5 = arith.constant 0.000000e+00 : f32
    %6 = vector.broadcast %cst_5 : f32 to vector<8x256xf32>
    %7 = arith.maximumf %5, %6 : vector<8x256xf32>
    %8 = arith.truncf %7 : vector<8x256xf32> to vector<8x256xbf16>
    %c0_6 = arith.constant 0 : index
    %c0_7 = arith.constant 0 : index
    %9 = vector.load %arg4[%c0_6, %c0_7] : memref<256x128xbf16, #tpu.memory_space<vmem>>, vector<256x128xbf16>
    %cst_8 = arith.constant dense<0.000000e+00> : vector<8x128xf32>
    %10 = tpu.matmul %8, %9, %cst_8 {dimension_numbers = #tpu.dot_dimension_numbers<[1], [0], [0], [1], [0, 0, 1, 1], [], []>} : vector<8x256xbf16>, vector<256x128xbf16>, vector<8x128xf32> -> vector<8x128xf32>
    %c0_9 = arith.constant 0 : index
    %c0_10 = arith.constant 0 : index
    %11 = vector.load %arg5[%c0_9, %c0_10] : memref<1x128xf32, #tpu.memory_space<vmem>>, vector<1x128xf32>
    %12 = vector.broadcast %11 : vector<1x128xf32> to vector<8x128xf32>
    %13 = arith.addf %10, %12 : vector<8x128xf32>
    %cst_11 = arith.constant 0.000000e+00 : f32
    %14 = vector.broadcast %cst_11 : f32 to vector<8x128xf32>
    %15 = arith.maximumf %13, %14 : vector<8x128xf32>
    %16 = arith.truncf %15 : vector<8x128xf32> to vector<8x128xbf16>
    %c0_12 = arith.constant 0 : index
    %c0_13 = arith.constant 0 : index
    %17 = vector.load %arg6[%c0_12, %c0_13] : memref<128x128xbf16, #tpu.memory_space<vmem>>, vector<128x128xbf16>
    %cst_14 = arith.constant dense<0.000000e+00> : vector<8x128xf32>
    %18 = tpu.matmul %16, %17, %cst_14 {dimension_numbers = #tpu.dot_dimension_numbers<[1], [0], [0], [1], [0, 0, 1, 1], [], []>} : vector<8x128xbf16>, vector<128x128xbf16>, vector<8x128xf32> -> vector<8x128xf32>
    %c0_15 = arith.constant 0 : index
    %c0_16 = arith.constant 0 : index
    %19 = vector.load %arg7[%c0_15, %c0_16] : memref<1x128xf32, #tpu.memory_space<vmem>>, vector<1x128xf32>
    %20 = vector.broadcast %19 : vector<1x128xf32> to vector<8x128xf32>
    %21 = arith.addf %18, %20 : vector<8x128xf32>
    %cst_17 = arith.constant dense<0xFF800000> : vector<8xf32>
    %22 = vector.multi_reduction <maximumf>, %21, %cst_17 [1] : vector<8x128xf32> to vector<8xf32>
    %23 = vector.shape_cast %22 : vector<8xf32> to vector<8x1xf32>
    %24 = vector.broadcast %23 : vector<8x1xf32> to vector<8x128xf32>
    %25 = arith.subf %21, %24 : vector<8x128xf32>
    %26 = math.exp %25 : vector<8x128xf32>
    %cst_18 = arith.constant dense<0.000000e+00> : vector<8xf32>
    %27 = vector.multi_reduction <add>, %26, %cst_18 [1] : vector<8x128xf32> to vector<8xf32>
    %28 = vector.shape_cast %27 : vector<8xf32> to vector<8x1xf32>
    %29 = tpu.reciprocal %28 {approx = true} : vector<8x1xf32> -> vector<8x1xf32>
    %30 = vector.broadcast %29 : vector<8x1xf32> to vector<8x128xf32>
    %31 = arith.mulf %26, %30 : vector<8x128xf32>
    %c0_19 = arith.constant 0 : index
    %c0_20 = arith.constant 0 : index
    %32 = vector.load %arg8[%c0_19, %c0_20] : memref<8x128xf32, #tpu.memory_space<vmem>>, vector<8x128xf32>
    tpu.vector_store %arg8[%c0_19, %c0_20], %31 {strides = array<i32>} : memref<8x128xf32, #tpu.memory_space<vmem>>, vector<8x128xf32>,
    return
  }
  func.func @transform_0(%arg0: i32) -> (i32, i32) {
    %c0_i32 = arith.constant 0 : i32
    %c0_i32_0 = arith.constant 0 : i32
    return %arg0, %c0_i32 : i32, i32
  }
  func.func @transform_1(%arg0: i32) -> (i32, i32) {
    %c0_i32 = arith.constant 0 : i32
    %c0_i32_0 = arith.constant 0 : i32
    %c0_i32_1 = arith.constant 0 : i32
    return %c0_i32, %c0_i32_0 : i32, i32
  }
  func.func @transform_2(%arg0: i32) -> (i32, i32) {
    %c0_i32 = arith.constant 0 : i32
    %c0_i32_0 = arith.constant 0 : i32
    %c0_i32_1 = arith.constant 0 : i32
    return %c0_i32, %c0_i32_0 : i32, i32
  }
  func.func @transform_3(%arg0: i32) -> (i32, i32) {
    %c0_i32 = arith.constant 0 : i32
    %c0_i32_0 = arith.constant 0 : i32
    %c0_i32_1 = arith.constant 0 : i32
    return %c0_i32, %c0_i32_0 : i32, i32
  }
  func.func @transform_4(%arg0: i32) -> (i32, i32) {
    %c0_i32 = arith.constant 0 : i32
    %c0_i32_0 = arith.constant 0 : i32
    %c0_i32_1 = arith.constant 0 : i32
    return %c0_i32, %c0_i32_0 : i32, i32
  }
  func.func @transform_5(%arg0: i32) -> (i32, i32) {
    %c0_i32 = arith.constant 0 : i32
    %c0_i32_0 = arith.constant 0 : i32
    %c0_i32_1 = arith.constant 0 : i32
    return %c0_i32, %c0_i32_0 : i32, i32
  }
  func.func @transform_6(%arg0: i32) -> (i32, i32) {
    %c0_i32 = arith.constant 0 : i32
    %c0_i32_0 = arith.constant 0 : i32
    %c0_i32_1 = arith.constant 0 : i32
    return %c0_i32, %c0_i32_0 : i32, i32
  }
  func.func @transform_7(%arg0: i32) -> (i32, i32) {
    %c0_i32 = arith.constant 0 : i32
    %c0_i32_0 = arith.constant 0 : i32
    return %arg0, %c0_i32 : i32, i32
  }
}

</mosaic_0001>

<bundles_post_ra>
// kernel: tpu_custom_call.1
= control target key start
LH: loop header
LB: loop body
LE: loop exit
PB: predicated region body
PF: predicated region fallthrough
CT: control target
= control target key end

     0   :  { %12 = vsyncpa [#allocation3], 0  ;;  %s891_s0 = inlined_call_operand.hbm [shape: bf16[8,128], index: 0, kind: input, shape index: {}]   ;;  %s892_s1 = inlined_call_operand.hbm [shape: bf16[128,256], index: 1, kind: input, shape index: {}]   ;;  %s893_s2 = inlined_call_operand.vmem [shape: f32[1,256], index: 2, kind: input, shape index: {}]   ;;  %s894_s3 = inlined_call_operand.hbm [shape: bf16[256,128], index: 3, kind: input, shape index: {}]   ;;  %s895_s4 = inlined_call_operand.vmem [shape: f32[1,128], index: 4, kind: input, shape index: {}]   ;;  %s896_s5 = inlined_call_operand.hbm [shape: bf16[128,128], index: 5, kind: input, shape index: {}]   ;;  %s897_s6 = inlined_call_operand.vmem [shape: f32[1,128], index: 6, kind: input, shape index: {}]   ;;  %s898_s7 = inlined_call_operand.hbm [shape: f32[8,128], index: 7, kind: output, shape index: {}]  }
   0x1   :  { %13 = vsyncpa [#allocation6], 0 }
   0x2   :  { %14 = vsyncpa [#allocation9], 0 }
   0x3   :  { %15 = vsyncpa [#allocation4], 0  ;;  %s815_s24 = smov [#allocation5]  }
   0x4   :  { %s31_s25 = sshll.u32 %s815_s24, 4  ;;  %s32_s25 = int_to_ptr.vmem [resolvable:$true] %s31_s25 }
   0x5   :  { %s715_s26 = scalar_lea.vmem %s32_s25, 2048  ;;  %p720_p1 = scmp.lt.s32.totalorder %s32_s25, %s32_s25 }
   0x6   :  { %p716_p0 = scmp.ne.s32.totalorder %s32_s25, %s715_s26  ;;  %p721_p2 = scmp.lt.s32.totalorder %s715_s26, %s715_s26 }
   0x8   :  { %p722_p3 = por %p721_p2, %p720_p1 }
   0xa   :  { %p723_p4 = pnand %p722_p3, %p716_p0 }
   0xc   :  { %726 = shalt.err (!%p723_p4)
}
   0xd   :  { %s816_s27 = smov 128   ;;  %s817_s28 = smov 8  }
   0xe   :  { %37 = dma.hbm_to_vmem [thread:$0]  %s892_s1, 2048, %s32_s25, [#allocation6], %s816_s27, %s816_s27, %s817_s28  }
   0xf   :  { %s818_s8 = smov [#allocation2]   ;;  %s819_s10 = smov [#allocation7]  }
  0x10   :  { %s22_s9 = sshll.u32 %s818_s8, 4  ;;  %s45_s11 = sshll.u32 %s819_s10, 4  ;;  %s23_s9 = int_to_ptr.vmem [resolvable:$true] %s22_s9  ;;  %s46_s11 = int_to_ptr.vmem [resolvable:$true] %s45_s11 }
  0x11   :  { %s735_s12 = scalar_lea.vmem %s23_s9, 64  ;;  %p740_p6 = scmp.lt.s32.totalorder %s23_s9, %s23_s9 }
  0x12   :  { %p736_p5 = scmp.ne.s32.totalorder %s23_s9, %s735_s12  ;;  %p741_p7 = scmp.lt.s32.totalorder %s735_s12, %s735_s12 }
  0x14   :  { %p742_p8 = por %p741_p7, %p740_p6 }
  0x16   :  { %p743_p9 = pnand %p742_p8, %p736_p5 }
  0x18   :  { %746 = shalt.err (!%p743_p9)
}
  0x19   :  { %25 = dma.hbm_to_vmem [thread:$0]  %s891_s0, 64, %s23_s9, [#allocation3]  }
  0x1a   :  { %s755_s15 = scalar_lea.vmem %s46_s11, 2048  ;;  %p760_p11 = scmp.lt.s32.totalorder %s46_s11, %s46_s11 }
  0x1b   :  { %p756_p10 = scmp.ne.s32.totalorder %s46_s11, %s755_s15  ;;  %p761_p12 = scmp.lt.s32.totalorder %s755_s15, %s755_s15 }
  0x1d   :  { %p762_p13 = por %p761_p12, %p760_p11 }
  0x1f   :  { %p763_p0 = pnand %p762_p13, %p756_p10 }
  0x21   :  { %766 = shalt.err (!%p763_p0)
}
  0x22   :  { %s820_s1 = smov 64   ;;  %s821_s16 = smov 4  }
  0x23   :  { %51 = dma.hbm_to_vmem [thread:$0]  %s894_s3, 2048, %s46_s11, [#allocation6], %s820_s1, %s820_s1, %s821_s16  }
  0x24   :  { %s822_s19 = smov [#allocation8]  }
  0x25   :  { %s59_s20 = sshll.u32 %s822_s19, 4  ;;  %s60_s20 = int_to_ptr.vmem [resolvable:$true] %s59_s20 }
  0x26   :  { %s775_s21 = scalar_lea.vmem %s60_s20, 1024  ;;  %p780_p2 = scmp.lt.s32.totalorder %s60_s20, %s60_s20 }
  0x27   :  { %p776_p1 = scmp.ne.s32.totalorder %s60_s20, %s775_s21  ;;  %p781_p3 = scmp.lt.s32.totalorder %s775_s21, %s775_s21 }
  0x29   :  { %p782_p4 = por %p781_p3, %p780_p2 }
  0x2b   :  { %p783_p5 = pnand %p782_p4, %p776_p1 }
  0x2d   :  { %786 = shalt.err (!%p783_p5)
}
  0x2e   :  { %65 = dma.hbm_to_vmem [thread:$0]  %s896_s5, 1024, %s60_s20, [#allocation9], %s820_s1, %s820_s1, %s821_s16  }
  0x2f   :  { %807 = dma.done.wait [#allocation3], 64  }
  0x30   :  { %808 = vsyncadd [#allocation3], 4294967232 }
  0x31   :  { %809 = dma.done.wait [#allocation6], 4096  }
  0x32   :  { %810 = vsyncadd [#allocation6], 4294963200 }
  0x33   :  { %811 = dma.done.wait [#allocation9], 1024  }
  0x34   :  { %812 = vsyncadd [#allocation9], 4294966272  ;;  %v823_v0 = vmov 0   ;;  %v655_v1 = vld [vmem:[#allocation5 + $0x74] ss:$8 sps:$4 sm:$0xff]   ;;  %v683_v15 = vld [vmem:[#allocation7 + $0x68] sm:$0xff]   ;;  %v100_v40 = vlaneseq }
  0x35   :  { %222 = vmatprep.mubr.bf16.mxu0 %v823_v0  ;;  %v657_v2 = vld [vmem:[#allocation5 + $0x70] ss:$8 sps:$4 sm:$0xff]   ;;  %190 = vmatprep.subr.bf16.mxu0 %v655_v1  ;;  %v658_v3 = vld [vmem:[#allocation5 + $0x64] ss:$8 sps:$4 sm:$0xff]   ;;  %v660_v4 = vld [vmem:[#allocation5 + $0x60] ss:$8 sps:$4 sm:$0xff]  }
  0x36   :  { %191 = vmatpush1.bf16.msra.mxu0 %v657_v2  ;;  %v661_v5 = vld [vmem:[#allocation5 + $0x54] ss:$8 sps:$4 sm:$0xff]   ;;  %v663_v6 = vld [vmem:[#allocation5 + $0x50] ss:$8 sps:$4 sm:$0xff]   ;;  %v664_v7 = vld [vmem:[#allocation5 + $0x44] ss:$8 sps:$4 sm:$0xff]  }
  0x37   :  { %192 = vmatprep.subr.bf16.mxu0 %v658_v3  ;;  %v666_v8 = vld [vmem:[#allocation5 + $0x40] ss:$8 sps:$4 sm:$0xff]   ;;  %v667_v9 = vld [vmem:[#allocation5 + $0x34] ss:$8 sps:$4 sm:$0xff]   ;;  %v669_v12 = vld [vmem:[#allocation5 + $0x30] ss:$8 sps:$4 sm:$0xff]  }
  0x38   :  { %v679_v10 = vld [vmem:[#allocation7 + $0x78] sm:$0xff]   ;;  %v681_v13 = vld [vmem:[#allocation7 + $0x70] sm:$0xff]   ;;  %v670_v16 = vld [vmem:[#allocation5 + $0x24] ss:$8 sps:$4 sm:$0xff]   ;;  %v824_v35 = vmov 0.0   ;;  %v101_v41 = vshrl.u32 %v100_v40, 7 }
  0x39   :  { %v680_v11 = vld [vmem:[#allocation7 + $0x38] sm:$0xff]   ;;  %592 = vmatprep.subr.bf16.mxu1 %v679_v10  ;;  %v682_v14 = vld [vmem:[#allocation7 + $0x30] sm:$0xff]   ;;  %v672_v17 = vld [vmem:[#allocation5 + $0x20] ss:$8 sps:$4 sm:$0xff]   ;;  %vm825_vm0 = vmmov 0  }
  0x3a   :  { %193 = vmatpush1.bf16.msra.mxu0 %v660_v4  ;;  %593 = vmatpush3.bf16.msra.mxu1 %v680_v11  ;;  %v684_v18 = vld [vmem:[#allocation7 + $0x28] sm:$0xff]   ;;  %v685_v19 = vld [vmem:[#allocation7 + $0x60] sm:$0xff]   ;;  %v673_v20 = vld [vmem:[#allocation5 + $0x14] ss:$8 sps:$4 sm:$0xff]   ;;  %v102_v42 = vsub.s32 0, %v101_v41  ;;  %v106_v44 = vsub.s32 1, %v101_v41 }
  0x3b   :  { %194 = vmatprep.subr.bf16.mxu0 %v661_v5  ;;  %594 = vmatprep.subr.bf16.mxu1 %v681_v13  ;;  %v675_v21 = vld [vmem:[#allocation5 + $0x10] ss:$8 sps:$4 sm:$0xff]   ;;  %v676_v22 = vld [vmem:[#allocation5 + $0x4] ss:$8 sps:$4 sm:$0xff]   ;;  %v678_v26 = vld [vmem:[#allocation5] ss:$8 sps:$4 sm:$0xff]  }
  0x3c   :  { %v686_v23 = vld [vmem:[#allocation7 + $0x20] sm:$0xff]   ;;  %v687_v24 = vld [vmem:[#allocation7 + $0x58] sm:$0xff]   ;;  %v689_v27 = vld [vmem:[#allocation7 + $0x50] sm:$0xff]  }
  0x3d   :  { %v688_v25 = vld [vmem:[#allocation7 + $0x18] sm:$0xff]   ;;  %v690_v28 = vld [vmem:[#allocation7 + $0x10] sm:$0xff]   ;;  %v691_v30 = vld [vmem:[#allocation7 + $0x48] sm:$0xff]  }
  0x3e   :  { %195 = vmatpush1.bf16.msra.mxu0 %v663_v6  ;;  %595 = vmatpush3.bf16.msra.mxu1 %v682_v14  ;;  %v81_v29 = vld [vmem:[#allocation2] sm:$0xf]  ;;  %v692_v31 = vld [vmem:[#allocation7 + $0x8] sm:$0xff]   ;;  %v693_v32 = vld [vmem:[#allocation7 + $0x40] sm:$0xff]  }
  0x3f   :  { %196 = vmatprep.subr.bf16.mxu0 %v664_v7  ;;  %596 = vmatprep.subr.bf16.mxu1 %v683_v15  ;;  %v694_v33 = vld [vmem:[#allocation7] sm:$0xff]   ;;  %v695_v34 = vld [vmem:[#allocation8 + $0x38] sm:$0xff]   ;;  %v696_v36 = vld [vmem:[#allocation8 + $0x30] sm:$0xff]  }
  0x40   :  { %v697_v37 = vld [vmem:[#allocation8 + $0x28] sm:$0xff]   ;;  %v698_v38 = vld [vmem:[#allocation8 + $0x20] sm:$0xff]   ;;  %v699_v39 = vld [vmem:[#allocation8 + $0x18] sm:$0xff]  }
  0x41   :  { %v98_v43 = vld [vmem:[%s893_s2] sm:$0x3]  ;;  %v700_v57 = vld [vmem:[#allocation8 + $0x10] sm:$0xff]   ;;  %v701_v58 = vld [vmem:[#allocation8 + $0x8] sm:$0xff]  }
  0x42   :  { %197 = vmatpush1.bf16.msra.mxu0 %v666_v8  ;;  %597 = vmatpush3.bf16.msra.mxu1 %v684_v18  ;;  %v103_v45 = vrot.slane %v98_v43, %v102_v42  ;;  %v107_v46 = vrot.slane %v98_v43, %v106_v44  ;;  %v702_v59 = vld [vmem:[#allocation8] sm:$0xff]   ;;  %v566_v61 = vld [vmem:[%s895_s4] ss:$0 sm:$0xff]  ;;  %s826_s4 = smov [#allocation10]  }
  0x43   :  { %198 = vmatprep.subr.bf16.mxu0 %v667_v9  ;;  %598 = vmatprep.subr.bf16.mxu1 %v685_v19  ;;  %v583_v5 = vld [vmem:[%s897_s6] ss:$0 sm:$0xff]  ;;  %s539_s26 = sshll.u32 %s826_s4, 4  ;;  %s540_s26 = int_to_ptr.vmem [resolvable:$true] %s539_s26 }
  0x44   :  { %s787_s6 = scalar_lea.vmem %s540_s26, 128  ;;  %p792_p7 = scmp.lt.s32.totalorder %s540_s26, %s540_s26 }
  0x45   :  { %p788_p6 = scmp.ne.s32.totalorder %s540_s26, %s787_s6  ;;  %p793_p8 = scmp.lt.s32.totalorder %s787_s6, %s787_s6 }
  0x46   :  { %199 = vmatpush1.bf16.msra.mxu0 %v669_v12  ;;  %599 = vmatpush3.bf16.msra.mxu1 %v686_v23 }
  0x47   :  { %200 = vmatprep.subr.bf16.mxu0 %v670_v16  ;;  %600 = vmatprep.subr.bf16.mxu1 %v687_v24  ;;  %p794_p9 = por %p793_p8, %p792_p7 }
  0x49   :  { %p795_p10 = pnand %p794_p9, %p788_p6 }
  0x4a   :  { %201 = vmatpush1.bf16.msra.mxu0 %v672_v17  ;;  %601 = vmatpush3.bf16.msra.mxu1 %v688_v25 }
  0x4b   :  { %202 = vmatprep.subr.bf16.mxu0 %v673_v20  ;;  %602 = vmatprep.subr.bf16.mxu1 %v689_v27 }
  0x4e   :  { %203 = vmatpush1.bf16.msra.mxu0 %v675_v21  ;;  %603 = vmatpush3.bf16.msra.mxu1 %v690_v28 }
  0x4f   :  { %204 = vmatprep.subr.bf16.mxu0 %v676_v22  ;;  %604 = vmatprep.subr.bf16.mxu1 %v691_v30 }
  0x52   :  { %205 = vmatpush1.bf16.msra.mxu0 %v678_v26  ;;  %605 = vmatpush3.bf16.msra.mxu1 %v692_v31 }
  0x53   :  { %606 = vmatprep.subr.bf16.mxu1 %v693_v32  ;;  %623 = vmatprep.subr.bf16.mxu0 %v824_v35 }
  0x55   :  { %223 = vmatmul.mubr.bf16.vlgmr.msra.gmra.mxu0 %v81_v29 }
  0x56   :  { %607 = vmatpush3.bf16.msra.mxu1 %v694_v33  ;;  %624 = vmatpush3.bf16.msra.mxu0 %v695_v34 }
  0x57   :  { %625 = vmatprep.subr.bf16.mxu0 %v824_v35  ;;  %639 = vmatprep.mubr.msk.bf16.mxu0 %vm825_vm0, %v824_v35 }
  0x5a   :  { %626 = vmatpush3.bf16.msra.mxu0 %v696_v36 }
  0x5b   :  { %627 = vmatprep.subr.bf16.mxu0 %v824_v35 }
  0x5e   :  { %628 = vmatpush3.bf16.msra.mxu0 %v697_v37 }
  0x5f   :  { %629 = vmatprep.subr.bf16.mxu0 %v824_v35 }
  0x62   :  { %630 = vmatpush3.bf16.msra.mxu0 %v698_v38 }
  0x63   :  { %631 = vmatprep.subr.bf16.mxu0 %v824_v35 }
  0x66   :  { %632 = vmatpush3.bf16.msra.mxu0 %v699_v39 }
  0x67   :  { %633 = vmatprep.subr.bf16.mxu0 %v824_v35 }
  0x6a   :  { %634 = vmatpush3.bf16.msra.mxu0 %v700_v57 }
  0x6b   :  { %635 = vmatprep.subr.bf16.mxu0 %v824_v35 }
  0x6e   :  { %636 = vmatpush3.bf16.msra.mxu0 %v701_v58 }
  0x6f   :  { %637 = vmatprep.subr.bf16.mxu0 %v824_v35 }
  0x72   :  { %638 = vmatpush3.bf16.msra.mxu0 %v702_v59 }
 0x115   :  { %v224_v47 = vpop.f32.mrf.mxu0 }
 0x116   :  { %v225_v48 = vadd.f32 %v224_v47, %v103_v45 }
 0x117   :  { %v226_v49 = vpop.f32.mrf.mxu0 }
 0x118   :  { %v227_v50 = vadd.f32 %v226_v49, %v107_v46  ;;  %v231_v51 = vmax.f32 %v225_v48, 0.0 }
 0x119   :  { %v228_v52 = vpop.f32.mrf.mxu0 }
 0x11a   :  { %v232_v53 = vmax.f32 %v227_v50, 0.0  ;;  %v233_v56 = vpack.c.bf16 %v231_v51, %v231_v51 }
 0x11b   :  { %v229_v54 = vpop.f32.mrf.mxu0 }
 0x11c   :  { %v234_v55 = vpack.c.bf16 %v232_v53, %v232_v53 }
 0x11e   :  { %402 = vmatprep.mubr.bf16.mxu1 %v234_v55 }
 0x11f   :  { %403 = vmatmul.mubr.bf16.vlgmr.msra.gmra.mxu1 %v233_v56 }
 0x1df   :  { %v608_v60 = vpop.f32.mrf.mxu1 }
 0x1e1   :  { %v609_v62 = vpop.f32.mrf.mxu1 }
 0x1e2   :  { %v610_v63 = vadd.f32 %v609_v62, %v608_v60 }
 0x1e3   :  { %v611_v0 = vpop.f32.mrf.mxu1 }
 0x1e4   :  { %v405_v1 = vadd.f32 %v610_v63, %v566_v61 }
 0x1e5   :  { %v612_v2 = vpop.f32.mrf.mxu1 }
 0x1e6   :  { %v410_v3 = vmax.f32 %v405_v1, 0.0 }
 0x1e8   :  { %v411_v4 = vpack.c.bf16 %v410_v3, %v410_v3 }
 0x1ea   :  { %640 = vmatmul.mubr.bf16.vlgmr.msra.gmra.mxu0 %v411_v4 }
 0x2aa   :  { %v517_v6 = vpop.f32.mrf.mxu0 }
 0x2ab   :  { %v518_v7 = vadd.f32 %v583_v5, %v517_v6 }
 0x2ac   :  { %v641_v8 = vpop.f32.mrf.mxu0 }
 0x2ad   :  { %523 = vmax.xlane.f32.xlu0 %v518_v7 }
 0x2ae   :  { %v520_v9 = vpop.f32.mrf.mxu0 }
 0x2b0   :  { %v642_v10 = vpop.f32.mrf.mxu0 }
 0x336   :  { %v524_v11 = vpop.xlane.xlu0 %523 }
 0x337   :  { %v525_v12 = vsub.f32 %v518_v7, %v524_v11 }
 0x339   :  { %v526_v13 = vmul.f32 1.442695, %v525_v12 }
 0x33b   :  { %703 = vpow2.f32 %v526_v13 }
 0x348   :  { %v704_v14 = vpop.eup %703 }
 0x349   :  { %528 = vadd.xlane.f32.xlu0 %v704_v14 }
 0x3d2   :  { %v529_v15 = vpop.xlane.xlu0 %528 }
 0x3d3   :  { %705 = vrcp.f32 %v529_v15 }
 0x3e0   :  { %v706_v16 = vpop.eup %705 }
 0x3e1   :  { %v531_v17 = vmul.f32 %v706_v16, %v704_v14 }
 0x3e3   :  { %532 = vst [vmem:[#allocation10] sm:$0xff] %v531_v17 }
 0x3e4   :  { %798 = shalt.err (!%p795_p10)
}
 0x3e5   :  { %542 = dma.vmem_to_hbm [thread:$0]  %s540_s26, 128, %s898_s7, [#allocation4]  }
 0x3e6   :  { %813 = dma.done.wait [#allocation4], 128  }
 0x3e7   :  { %814 = vsyncadd [#allocation4], 4294967168 }
 0x3e8   :  { %546 = vsyncpa [#allocation3], 1 }
 0x3e9   :  { %547 = vsyncpa [#allocation6], 1 }
 0x3ea   :  { %548 = vsyncpa [#allocation9], 1 }
 0x3eb   :  { %549 = vsyncpa [#allocation4], 1 }

</bundles_post_ra>
